<compile_context>
chip_gen: v7x
topology: tpu7x:2x2x1
jax: 0.10.0
libtpu: 0.0.40
codegen_flags: <defaults>
</compile_context>

<pallas_src>
import jax
import jax.numpy as jnp
from jax import lax
from jax.experimental import pallas as pl
from jax.experimental.pallas import tpu as pltpu

BN_EPS = 1e-5
LANE = 128


def _round_up(x, m):
    return (x + m - 1) // m * m


def _vmem_capacity_bytes():
    try:
        info = pltpu.get_tpu_info()
        return int(getattr(info, "vmem_capacity_bytes", 64 * 1024 * 1024))
    except Exception:
        return 64 * 1024 * 1024


def _batch_tile(batch, resident_bytes, stream_row_bytes, temp_row_bytes):
    """Footprint-based batch-tile choice plus a tight VMEM limit."""
    budget = min(_vmem_capacity_bytes(), 64 << 20) // 2   # headroom for Mosaic scratch
    tb = 1024
    # Keep >= 2 grid steps when the batch allows it so both v7x TCs get work.
    tb = min(tb, max(LANE, _round_up(-(-batch // 2), LANE)))
    per_row = 2 * stream_row_bytes + temp_row_bytes       # double-buffered streams
    while tb > LANE and resident_bytes + tb * per_row > budget:
        tb //= 2
    footprint = resident_bytes + tb * per_row
    vmem_limit = int(min(max(2 * footprint, 16 << 20), 32 << 20))
    return tb, vmem_limit


def _make_kernel(num_fields, num_extra_layers):
    """Fused gather + wide sum + MLP for one (TB,) batch tile."""

    def kernel(idx_ref, bias_ref, fold_ref, lin_ref, b1_ref, *rest):
        # rest = [W_l (in,out) bf16, b_l (1,out) f32] * num_extra_layers,
        #        w_out_row (1, h_last) bf16, out (1, TB) f32
        w_out_ref, out_ref = rest[-2], rest[-1]
        layer_refs = rest[:-2]

        idx = idx_ref[...]                                    # (TB, F) int32
        tb = idx_ref.shape[0]
        vpad = fold_ref.shape[0]

        # Multi-hot over the (padded) global vocabulary, built on the VPU.
        lane_id = lax.broadcasted_iota(jnp.int32, (tb, vpad), 1)
        multi = jnp.zeros((tb, vpad), jnp.float32)
        for f in range(num_fields):                           # static unroll
            multi = multi + jnp.where(idx[:, f:f + 1] == lane_id, 1.0, 0.0)

        # Wide part (FeaturesLinear), lane-major (1, TB), kept in f32.
        wide = lax.dot_general(lin_ref[...], multi,
                               dimension_numbers=(((1,), (1,)), ((), ())),
                               preferred_element_type=jnp.float32)

        # Fused embedding gather + first Linear (table pre-multiplied by W1).
        z = jnp.dot(multi.astype(jnp.bfloat16), fold_ref[...],
                    preferred_element_type=jnp.float32) + b1_ref[...]
        h = jnp.maximum(z, 0.0)      # ReLU; BN folded into next W/b; Dropout = id

        for l in range(num_extra_layers):
            w_ref, b_ref = layer_refs[2 * l], layer_refs[2 * l + 1]
            z = jnp.dot(h.astype(jnp.bfloat16), w_ref[...],
                        preferred_element_type=jnp.float32) + b_ref[...]
            h = jnp.maximum(z, 0.0)

        # 1-wide output head, computed directly in lane-major (1, TB) form.
        logits = lax.dot_general(w_out_ref[...], h.astype(jnp.bfloat16),
                                 dimension_numbers=(((1,), (1,)), ((), ())),
                                 preferred_element_type=jnp.float32)
        out_ref[...] = jax.nn.sigmoid(logits + wide + bias_ref[0])

    return kernel


def wide_deep_pallas(idx, prepared):
    """idx: (B, F) int32 global (offset-shifted) feature indices."""
    batch, num_fields = idx.shape
    fold = prepared["fold_table"]            # (Vp, H1p) bf16, VMEM-resident
    lin_row = prepared["lin_row"]            # (1, Vp) f32
    b1 = prepared["b1"]                      # (1, H1p) f32
    layers = prepared["layers"]              # ((W bf16, b f32), ...)
    w_out_row = prepared["w_out_row"]        # (1, Hlast_p) bf16
    out_bias = prepared["out_bias"]          # (1,) f32 scalar -> SMEM

    vpad, h1pad = fold.shape
    width_pads = [h1pad] + [w.shape[1] for w, _ in layers]

    resident = (fold.size * 2 + lin_row.size * 4 + b1.size * 4
                + sum(w.size * 2 + b.size * 4 for w, b in layers)
                + w_out_row.size * 2)
    stream_row = num_fields * 4 + 4                           # idx in + sigmoid out
    temp_row = vpad * 8 + sum(p * 10 for p in width_pads)     # in-kernel temporaries
    tb, vmem_limit = _batch_tile(batch, resident, stream_row, temp_row)

    batch_pad = _round_up(batch, tb)
    num_tiles = batch_pad // tb
    if batch_pad != batch:
        idx = jnp.pad(idx, ((0, batch_pad - batch), (0, 0)))  # idx 0 is valid; sliced off

    inputs = [idx, out_bias, fold, lin_row, b1]
    in_specs = [
        pl.BlockSpec((tb, num_fields), lambda i: (i, 0)),     # streamed per batch tile
        pl.BlockSpec(memory_space=pltpu.MemorySpace.SMEM),    # scalar logit bias
        pl.BlockSpec(fold.shape, lambda i: (0, 0)),           # resident tables/weights
        pl.BlockSpec(lin_row.shape, lambda i: (0, 0)),
        pl.BlockSpec(b1.shape, lambda i: (0, 0)),
    ]
    for w, b in layers:
        inputs += [w, b]
        in_specs += [pl.BlockSpec(w.shape, lambda i: (0, 0)),
                     pl.BlockSpec(b.shape, lambda i: (0, 0))]
    inputs.append(w_out_row)
    in_specs.append(pl.BlockSpec(w_out_row.shape, lambda i: (0, 0)))

    flops = 2 * batch_pad * (vpad * h1pad + vpad + w_out_row.shape[1]
                             + sum(w.shape[0] * w.shape[1] for w, _ in layers))
    cost = pl.CostEstimate(flops=int(flops), transcendentals=int(batch_pad),
                           bytes_accessed=int(batch_pad * stream_row + resident))

    out = pl.pallas_call(
        _make_kernel(num_fields, len(layers)),
        out_shape=jax.ShapeDtypeStruct((1, batch_pad), jnp.float32),
        grid=(num_tiles,),
        in_specs=in_specs,
        out_specs=pl.BlockSpec((1, tb), lambda i: (0, i)),    # lane-dense output
        compiler_params=pltpu.CompilerParams(
            dimension_semantics=("parallel",),
            vmem_limit_bytes=vmem_limit),
        cost_estimate=cost,
    )(*inputs)
    return out.reshape(-1)[:batch]


def init_params(key, field_dims, embed_dim, mlp_dims):
    """Matches the PyTorch module's parameterization (pre-folding)."""
    field_dims = tuple(int(d) for d in field_dims)
    total_feats = sum(field_dims)
    embed_output_dim = len(field_dims) * embed_dim

    def xavier(k, shape):
        bound = (6.0 / (shape[0] + shape[1])) ** 0.5
        return jax.random.uniform(k, shape, jnp.float32, -bound, bound)

    key, ke, kl = jax.random.split(key, 3)
    params = {
        "emb_table": xavier(ke, (total_feats, embed_dim)),
        "lin_table": 0.01 * jax.random.normal(kl, (total_feats, 1), jnp.float32),
        "lin_bias": jnp.zeros((1,), jnp.float32),
    }

    hidden = []
    in_dim = embed_output_dim
    for h in mlp_dims:
        key, kw, kb, kg, kc, km, kv = jax.random.split(key, 7)
        w = xavier(kw, (in_dim, h))
        b = 0.01 * jax.random.normal(kb, (1, h), jnp.float32)
        # non-trivial eval-mode BatchNorm statistics so the folding is exercised
        gamma = 1.0 + 0.1 * jax.random.normal(kg, (1, h), jnp.float32)
        beta = 0.1 * jax.random.normal(kc, (1, h), jnp.float32)
        mean = 0.1 * jax.random.normal(km, (1, h), jnp.float32)
        var = 0.5 + 0.5 * jnp.abs(jax.random.normal(kv, (1, h), jnp.float32))
        hidden.append((w, b, gamma, beta, mean, var))
        in_dim = h
    key, kw, kb = jax.random.split(key, 3)
    params["mlp"] = {
        "hidden": tuple(hidden),
        "Wout": xavier(kw, (in_dim, 1)),
        "bout": 0.01 * jax.random.normal(kb, (1, 1), jnp.float32),
    }

    offs = [0]
    for d in field_dims[:-1]:
        offs.append(offs[-1] + d)
    params["offsets"] = jnp.asarray(offs, dtype=jnp.int32)
    return params


def prepare_inference_params(params, field_dims, embed_dim):
    """Host-side precompute: fold eval BN into the *next* Linear, fold Linear #1
    into the embedding table, fold scalar biases, pad vocab / hidden widths to
    128 lanes, and cast MXU operands to bf16."""
    field_dims = tuple(int(d) for d in field_dims)
    hidden = params["mlp"]["hidden"]
    assert len(hidden) >= 1, "need at least one hidden layer"
    w_out, b_out = params["mlp"]["Wout"], params["mlp"]["bout"]

    # 1) fold BatchNorm1d (eval; module order Linear->ReLU->BN->Dropout) into
    #    the following Linear; the last BN folds into Wout / bout.
    folded = []
    s_prev = t_prev = None
    for w, b, gamma, beta, mean, var in hidden:
        if s_prev is not None:
            b = b + (t_prev @ w)[None, :]        # uses the un-scaled W
            w = w * s_prev[:, None]
        s = gamma[0] * lax.rsqrt(var[0] + BN_EPS)
        t = beta[0] - mean[0] * s
        folded.append((w, b))
        s_prev, t_prev = s, t
    b_out = b_out + (t_prev @ w_out)[None, :][0][None, :]
    w_out = w_out * s_prev[:, None]

    # 2) fold Linear #1 into the embedding table (per-field W1 block).
    emb = params["emb_table"]
    w1, b1 = folded[0]
    h1 = w1.shape[1]
    total_feats = emb.shape[0]
    fold = jnp.zeros((total_feats, h1), jnp.float32)
    row = 0
    for f, dim in enumerate(field_dims):
        blk = w1[f * embed_dim:(f + 1) * embed_dim, :]
        fold = fold.at[row:row + dim, :].set(emb[row:row + dim, :] @ blk)
        row += dim

    # 3) lane padding (vocab / hidden widths -> multiples of 128); zero pads
    #    preserve semantics: ReLU(0)=0 and padded rows/cols of later W are 0.
    vpad = _round_up(total_feats, LANE)
    h1pad = _round_up(h1, LANE)
    fold_pad = jnp.zeros((vpad, h1pad), jnp.float32).at[:total_feats, :h1].set(fold)
    b1_pad = jnp.zeros((1, h1pad), jnp.float32).at[:, :h1].set(b1)
    lin_row = jnp.zeros((1, vpad), jnp.float32).at[0, :total_feats].set(
        params["lin_table"][:, 0])

    layers = []
    in_pad = h1pad
    for w, b in folded[1:]:
        di, do = w.shape
        do_pad = _round_up(do, LANE)
        wp = jnp.zeros((in_pad, do_pad), jnp.float32).at[:di, :do].set(w)
        bp = jnp.zeros((1, do_pad), jnp.float32).at[:, :do].set(b)
        layers.append((wp.astype(jnp.bfloat16), bp))
        in_pad = do_pad
    h_last = w_out.shape[0]
    w_out_row = jnp.zeros((1, in_pad), jnp.float32).at[0, :h_last].set(w_out[:, 0])

    return {
        "offsets": params["offsets"],
        "fold_table": fold_pad.astype(jnp.bfloat16),
        "lin_row": lin_row,                            # f32: wide path stays f32
        "b1": b1_pad,
        "layers": tuple(layers),
        "w_out_row": w_out_row.astype(jnp.bfloat16),   # bf16 output head
        # FeaturesLinear bias + folded MLP output bias: one scalar on the logit.
        "out_bias": (params["lin_bias"][0] + b_out[0, 0]).reshape(1),
    }


def reference_forward(x, params):
    """Pure-JAX f32 eval-mode reference matching the PyTorch module."""
    idx = x + params["offsets"][None, :]
    emb = params["emb_table"][idx]                                   # (B, F, E)
    wide = jnp.sum(params["lin_table"][idx][:, :, 0], axis=1) + params["lin_bias"][0]
    h = emb.reshape(emb.shape[0], -1)
    for w, b, gamma, beta, mean, var in params["mlp"]["hidden"]:
        h = jnp.maximum(h @ w + b, 0.0)                              # Linear -> ReLU
        h = gamma * (h - mean) / jnp.sqrt(var + BN_EPS) + beta       # BatchNorm1d (eval)
        # Dropout: identity in eval
    logit = (h @ params["mlp"]["Wout"] + params["mlp"]["bout"])[:, 0] + wide
    return jax.nn.sigmoid(logit)


@jax.jit
def wide_deep_forward(x, prepared):
    """x: int32 (batch, num_fields) of raw per-field categorical indices."""
    idx = (x + prepared["offsets"][None, :]).astype(jnp.int32)
    return wide_deep_pallas(idx, prepared)


if __name__ == "__main__":
    field_dims = (8, 16, 24)        # 3 fields, global vocab = 48
    embed_dim = 16                  # embed_output_dim = 48
    mlp_dims = (32, 16)
    batch = 2

    key = jax.random.PRNGKey(0)
    pkey, xkey = jax.random.split(key)
    params = init_params(pkey, field_dims, embed_dim, mlp_dims)
    prepared = prepare_inference_params(params, field_dims, embed_dim)

    # raw per-field categorical indices, each < its field_dim
    maxes = jnp.asarray(field_dims, dtype=jnp.int32)
    x = (jax.random.randint(xkey, (batch, len(field_dims)), 0, 1 << 16,
                            dtype=jnp.int32) % maxes[None, :])

    out = jax.block_until_ready(wide_deep_forward(x, prepared))
    ref = reference_forward(x, params)

    assert out.shape == (batch,)
    assert bool(jnp.all(jnp.isfinite(out)))
    assert bool(jnp.all((out >= 0.0) & (out <= 1.0)))
    err = float(jnp.max(jnp.abs(out - ref)))
    assert err < 2e-2, f"max abs err vs f32 reference: {err}"
    print("KERNEL_OK")
</pallas_src>

<mosaic_0001>
module attributes {stable_mosaic.version = 11 : i64} {
  func.func @kernel(%arg0: i32, %arg1: memref<128x3xi32, #tpu.memory_space<vmem>>, %arg2: memref<1xf32, #tpu.memory_space<smem>>, %arg3: memref<128x128xbf16, #tpu.memory_space<vmem>>, %arg4: memref<1x128xf32, #tpu.memory_space<vmem>>, %arg5: memref<1x128xf32, #tpu.memory_space<vmem>>, %arg6: memref<128x128xbf16, #tpu.memory_space<vmem>>, %arg7: memref<1x128xf32, #tpu.memory_space<vmem>>, %arg8: memref<1x128xbf16, #tpu.memory_space<vmem>>, %arg9: memref<1x128xf32, #tpu.memory_space<vmem>>) attributes {dimension_semantics = [#tpu.dimension_semantics<parallel>], iteration_bounds = array<i64: 1>, scalar_prefetch = 0 : i64, scratch_operands = 0 : i64, tpu.core_type = #tpu.core_type<tc>, window_params = [{transform_indices = @transform_0, window_bounds = array<i64: 128, 3>}, {transform_indices = @transform_1, window_bounds = array<i64: 1>}, {pipeline_mode = #tpu.pipeline_mode<synchronous>, transform_indices = @transform_2, window_bounds = array<i64: 128, 128>}, {pipeline_mode = #tpu.pipeline_mode<synchronous>, transform_indices = @transform_3, window_bounds = array<i64: 1, 128>}, {pipeline_mode = #tpu.pipeline_mode<synchronous>, transform_indices = @transform_4, window_bounds = array<i64: 1, 128>}, {pipeline_mode = #tpu.pipeline_mode<synchronous>, transform_indices = @transform_5, window_bounds = array<i64: 128, 128>}, {pipeline_mode = #tpu.pipeline_mode<synchronous>, transform_indices = @transform_6, window_bounds = array<i64: 1, 128>}, {pipeline_mode = #tpu.pipeline_mode<synchronous>, transform_indices = @transform_7, window_bounds = array<i64: 1, 128>}, {transform_indices = @transform_8, window_bounds = array<i64: 1, 128>}]} {
    %c0 = arith.constant 0 : index
    %c0_0 = arith.constant 0 : index
    %0 = vector.load %arg1[%c0, %c0_0] : memref<128x3xi32, #tpu.memory_space<vmem>>, vector<128x3xi32>
    %1 = tpu.iota {dimensions = array<i32: 1>} : vector<128x128xi32>
    %cst = arith.constant 0.000000e+00 : f32
    %2 = vector.broadcast %cst : f32 to vector<128x128xf32>
    %3 = vector.extract_strided_slice %0 {offsets = [0, 0], sizes = [128, 1], strides = [1, 1]} : vector<128x3xi32> to vector<128x1xi32>
    %4 = vector.broadcast %3 : vector<128x1xi32> to vector<128x128xi32>
    %5 = arith.cmpi eq, %4, %1 : vector<128x128xi32>
    %cst_1 = arith.constant 1.000000e+00 : f32
    %cst_2 = arith.constant 0.000000e+00 : f32
    %6 = vector.broadcast %cst_1 : f32 to vector<128x128xf32>
    %7 = vector.broadcast %cst_2 : f32 to vector<128x128xf32>
    %8 = arith.select %5, %6, %7 : vector<128x128xi1>, vector<128x128xf32>
    %9 = arith.addf %2, %8 : vector<128x128xf32>
    %10 = vector.extract_strided_slice %0 {offsets = [0, 1], sizes = [128, 1], strides = [1, 1]} : vector<128x3xi32> to vector<128x1xi32>
    %11 = vector.broadcast %10 : vector<128x1xi32> to vector<128x128xi32>
    %12 = arith.cmpi eq, %11, %1 : vector<128x128xi32>
    %cst_3 = arith.constant 1.000000e+00 : f32
    %cst_4 = arith.constant 0.000000e+00 : f32
    %13 = vector.broadcast %cst_3 : f32 to vector<128x128xf32>
    %14 = vector.broadcast %cst_4 : f32 to vector<128x128xf32>
    %15 = arith.select %12, %13, %14 : vector<128x128xi1>, vector<128x128xf32>
    %16 = arith.addf %9, %15 : vector<128x128xf32>
    %17 = vector.extract_strided_slice %0 {offsets = [0, 2], sizes = [128, 1], strides = [1, 1]} : vector<128x3xi32> to vector<128x1xi32>
    %18 = vector.broadcast %17 : vector<128x1xi32> to vector<128x128xi32>
    %19 = arith.cmpi eq, %18, %1 : vector<128x128xi32>
    %cst_5 = arith.constant 1.000000e+00 : f32
    %cst_6 = arith.constant 0.000000e+00 : f32
    %20 = vector.broadcast %cst_5 : f32 to vector<128x128xf32>
    %21 = vector.broadcast %cst_6 : f32 to vector<128x128xf32>
    %22 = arith.select %19, %20, %21 : vector<128x128xi1>, vector<128x128xf32>
    %23 = arith.addf %16, %22 : vector<128x128xf32>
    %c0_7 = arith.constant 0 : index
    %c0_8 = arith.constant 0 : index
    %24 = vector.load %arg4[%c0_7, %c0_8] : memref<1x128xf32, #tpu.memory_space<vmem>>, vector<1x128xf32>
    %cst_9 = arith.constant dense<0.000000e+00> : vector<1x128xf32>
    %25 = tpu.matmul %24, %23, %cst_9 {dimension_numbers = #tpu.dot_dimension_numbers<[1], [1], [0], [0], [0, 0, 1, 0], [], []>} : vector<1x128xf32>, vector<128x128xf32>, vector<1x128xf32> -> vector<1x128xf32>
    %26 = arith.truncf %23 : vector<128x128xf32> to vector<128x128xbf16>
    %c0_10 = arith.constant 0 : index
    %c0_11 = arith.constant 0 : index
    %27 = vector.load %arg3[%c0_10, %c0_11] : memref<128x128xbf16, #tpu.memory_space<vmem>>, vector<128x128xbf16>
    %cst_12 = arith.constant dense<0.000000e+00> : vector<128x128xf32>
    %28 = tpu.matmul %26, %27, %cst_12 {dimension_numbers = #tpu.dot_dimension_numbers<[1], [0], [0], [1], [0, 0, 1, 1], [], []>} : vector<128x128xbf16>, vector<128x128xbf16>, vector<128x128xf32> -> vector<128x128xf32>
    %c0_13 = arith.constant 0 : index
    %c0_14 = arith.constant 0 : index
    %29 = vector.load %arg5[%c0_13, %c0_14] : memref<1x128xf32, #tpu.memory_space<vmem>>, vector<1x128xf32>
    %30 = vector.broadcast %29 : vector<1x128xf32> to vector<128x128xf32>
    %31 = arith.addf %28, %30 : vector<128x128xf32>
    %cst_15 = arith.constant 0.000000e+00 : f32
    %32 = vector.broadcast %cst_15 : f32 to vector<128x128xf32>
    %33 = arith.maximumf %31, %32 : vector<128x128xf32>
    %34 = arith.truncf %33 : vector<128x128xf32> to vector<128x128xbf16>
    %c0_16 = arith.constant 0 : index
    %c0_17 = arith.constant 0 : index
    %35 = vector.load %arg6[%c0_16, %c0_17] : memref<128x128xbf16, #tpu.memory_space<vmem>>, vector<128x128xbf16>
    %cst_18 = arith.constant dense<0.000000e+00> : vector<128x128xf32>
    %36 = tpu.matmul %34, %35, %cst_18 {dimension_numbers = #tpu.dot_dimension_numbers<[1], [0], [0], [1], [0, 0, 1, 1], [], []>} : vector<128x128xbf16>, vector<128x128xbf16>, vector<128x128xf32> -> vector<128x128xf32>
    %c0_19 = arith.constant 0 : index
    %c0_20 = arith.constant 0 : index
    %37 = vector.load %arg7[%c0_19, %c0_20] : memref<1x128xf32, #tpu.memory_space<vmem>>, vector<1x128xf32>
    %38 = vector.broadcast %37 : vector<1x128xf32> to vector<128x128xf32>
    %39 = arith.addf %36, %38 : vector<128x128xf32>
    %cst_21 = arith.constant 0.000000e+00 : f32
    %40 = vector.broadcast %cst_21 : f32 to vector<128x128xf32>
    %41 = arith.maximumf %39, %40 : vector<128x128xf32>
    %c0_22 = arith.constant 0 : index
    %c0_23 = arith.constant 0 : index
    %42 = vector.load %arg8[%c0_22, %c0_23] : memref<1x128xbf16, #tpu.memory_space<vmem>>, vector<1x128xbf16>
    %43 = arith.truncf %41 : vector<128x128xf32> to vector<128x128xbf16>
    %cst_24 = arith.constant dense<0.000000e+00> : vector<1x128xf32>
    %44 = tpu.matmul %42, %43, %cst_24 {dimension_numbers = #tpu.dot_dimension_numbers<[1], [1], [0], [0], [0, 0, 1, 0], [], []>} : vector<1x128xbf16>, vector<128x128xbf16>, vector<1x128xf32> -> vector<1x128xf32>
    %45 = arith.addf %44, %25 : vector<1x128xf32>
    %c0_25 = arith.constant 0 : index
    %46 = memref.load %arg2[%c0_25] : memref<1xf32, #tpu.memory_space<smem>>
    %47 = vector.broadcast %46 : f32 to vector<1x128xf32>
    %48 = arith.addf %45, %47 : vector<1x128xf32>
    %49 = arith.negf %48 : vector<1x128xf32>
    %50 = math.exp %49 : vector<1x128xf32>
    %cst_26 = arith.constant 1.000000e+00 : f32
    %51 = vector.broadcast %cst_26 : f32 to vector<1x128xf32>
    %52 = arith.addf %51, %50 : vector<1x128xf32>
    %53 = arith.divf %51, %52 : vector<1x128xf32>
    %c0_27 = arith.constant 0 : index
    %c0_28 = arith.constant 0 : index
    %54 = vector.load %arg9[%c0_27, %c0_28] : memref<1x128xf32, #tpu.memory_space<vmem>>, vector<1x128xf32>
    tpu.vector_store %arg9[%c0_27, %c0_28], %53 {strides = array<i32>} : memref<1x128xf32, #tpu.memory_space<vmem>>, vector<1x128xf32>,
    return
  }
  func.func @transform_0(%arg0: i32) -> (i32, i32) {
    %c0_i32 = arith.constant 0 : i32
    %c0_i32_0 = arith.constant 0 : i32
    return %arg0, %c0_i32 : i32, i32
  }
  func.func @transform_1(%arg0: i32) -> i32 {
    %c0_i32 = arith.constant 0 : i32
    %c0_i32_0 = arith.constant 0 : i32
    return %c0_i32 : i32
  }
  func.func @transform_2(%arg0: i32) -> (i32, i32) {
    %c0_i32 = arith.constant 0 : i32
    %c0_i32_0 = arith.constant 0 : i32
    %c0_i32_1 = arith.constant 0 : i32
    return %c0_i32, %c0_i32_0 : i32, i32
  }
  func.func @transform_3(%arg0: i32) -> (i32, i32) {
    %c0_i32 = arith.constant 0 : i32
    %c0_i32_0 = arith.constant 0 : i32
    %c0_i32_1 = arith.constant 0 : i32
    return %c0_i32, %c0_i32_0 : i32, i32
  }
  func.func @transform_4(%arg0: i32) -> (i32, i32) {
    %c0_i32 = arith.constant 0 : i32
    %c0_i32_0 = arith.constant 0 : i32
    %c0_i32_1 = arith.constant 0 : i32
    return %c0_i32, %c0_i32_0 : i32, i32
  }
  func.func @transform_5(%arg0: i32) -> (i32, i32) {
    %c0_i32 = arith.constant 0 : i32
    %c0_i32_0 = arith.constant 0 : i32
    %c0_i32_1 = arith.constant 0 : i32
    return %c0_i32, %c0_i32_0 : i32, i32
  }
  func.func @transform_6(%arg0: i32) -> (i32, i32) {
    %c0_i32 = arith.constant 0 : i32
    %c0_i32_0 = arith.constant 0 : i32
    %c0_i32_1 = arith.constant 0 : i32
    return %c0_i32, %c0_i32_0 : i32, i32
  }
  func.func @transform_7(%arg0: i32) -> (i32, i32) {
    %c0_i32 = arith.constant 0 : i32
    %c0_i32_0 = arith.constant 0 : i32
    %c0_i32_1 = arith.constant 0 : i32
    return %c0_i32, %c0_i32_0 : i32, i32
  }
  func.func @transform_8(%arg0: i32) -> (i32, i32) {
    %c0_i32 = arith.constant 0 : i32
    %c0_i32_0 = arith.constant 0 : i32
    return %c0_i32, %arg0 : i32, i32
  }
}

</mosaic_0001>

<bundles_post_ra>
// kernel: wide_deep_forward.1
= control target key start
LH: loop header
LB: loop body
LE: loop exit
PB: predicated region body
PF: predicated region fallthrough
CT: control target
= control target key end

     0   :  { %v1126_v0 = vmov 1   ;;  %v1127_v1 = vmov 0   ;;  %v1128_v11 = vmov 2   ;;  %v1129_v19 = vmov 0.0|0.0   ;;  %s1462_s0 = inlined_call_operand.vmem [shape: s32[128,3], index: 0, kind: input, shape index: {}]   ;;  %s1463_s2 = inlined_call_operand.vmem [shape: bf16[128,128], index: 2, kind: input, shape index: {}]   ;;  %s1464_s5 = inlined_call_operand.vmem [shape: bf16[128,128], index: 5, kind: input, shape index: {}]   ;;  %s1465_s4 = inlined_call_operand.vmem [shape: f32[1,128], index: 4, kind: input, shape index: {}]   ;;  %s1466_s3 = inlined_call_operand.vmem [shape: f32[1,128], index: 3, kind: input, shape index: {}]   ;;  %s1467_s6 = inlined_call_operand.vmem [shape: f32[1,128], index: 6, kind: input, shape index: {}]   ;;  %s1468_s7 = inlined_call_operand.vmem [shape: bf16[1,128], index: 7, kind: input, shape index: {}]   ;;  %s1469_s1 = inlined_call_operand.<no memory space> [shape: f32[1], index: 1, kind: input, shape index: {}]   ;;  %s1470_s8 = inlined_call_operand.vmem [shape: f32[1,128], index: 8, kind: output, shape index: {}]  }
   0x1   :  { %1082 = vset.pattern.permute.xlu1 %v1126_v0  ;;  %1081 = vset.pattern.permute.xlu0 %v1127_v1  ;;  %v31_v2 = vld [vmem:[%s1462_s0] sm:$0xff]  ;;  %v32_v3 = vld [vmem:[%s1462_s0 + $0x8] sm:$0xff]  ;;  %v33_v4 = vld [vmem:[%s1462_s0 + $0x10] sm:$0xff]  ;;  %v47_v34 = vlaneseq  ;;  %v1130_v42 = vmov 0.0  }
   0x2   :  { %146 = vperm.xlu1 %1082, %v31_v2   ;;  %50 = vperm.xlu0 %1081, %v31_v2   ;;  %v34_v5 = vld [vmem:[%s1462_s0 + $0x18] sm:$0xff]  ;;  %v1106_v6 = vld [vmem:[%s1463_s2] sm:$0xff]   ;;  %v1107_v7 = vld [vmem:[%s1463_s2 + $0x8] sm:$0xff]  }
   0x3   :  { %967 = vmatprep.subr.bf16.mxu1 %v1106_v6  ;;  %v1108_v8 = vld [vmem:[%s1463_s2 + $0x10] sm:$0xff]   ;;  %v36_v9 = vld [vmem:[%s1462_s0 + $0x28] sm:$0xff]  ;;  %v1109_v10 = vld [vmem:[%s1463_s2 + $0x18] sm:$0xff]   ;;  %1051 = vmatprep.subr.bf16.mxu0 %v1129_v19  ;;  %v1278_v38 = vand.u32 127, %v47_v34 }
   0x4   :  { %968 = vmatpush3.bf16.msra.mxu1 %v1106_v6  ;;  %v37_v12 = vld [vmem:[%s1462_s0 + $0x30] sm:$0xff]  ;;  %v1110_v13 = vld [vmem:[%s1463_s2 + $0x20] sm:$0xff]   ;;  %v1111_v14 = vld [vmem:[%s1463_s2 + $0x28] sm:$0xff]  }
   0x5   :  { %969 = vmatprep.subr.bf16.mxu1 %v1107_v7  ;;  %v35_v15 = vld [vmem:[%s1462_s0 + $0x20] sm:$0xff]  ;;  %v1112_v16 = vld [vmem:[%s1463_s2 + $0x30] sm:$0xff]   ;;  %v38_v17 = vld [vmem:[%s1462_s0 + $0x38] sm:$0xff] }
   0x6   :  { %149 = vperm.xlu1 %1082, %v32_v3   ;;  %53 = vperm.xlu0 %1081, %v32_v3   ;;  %v1113_v18 = vld [vmem:[%s1463_s2 + $0x38] sm:$0xff]   ;;  %v40_v20 = vld [vmem:[%s1462_s0 + $0x48] sm:$0xff]  ;;  %v41_v21 = vld [vmem:[%s1462_s0 + $0x50] sm:$0xff] }
   0x7   :  { %v43_v22 = vld [vmem:[%s1462_s0 + $0x60] sm:$0xff]  ;;  %v44_v23 = vld [vmem:[%s1462_s0 + $0x68] sm:$0xff]  ;;  %v45_v25 = vld [vmem:[%s1462_s0 + $0x70] sm:$0xff] }
   0x8   :  { %970 = vmatpush3.bf16.msra.mxu1 %v1107_v7  ;;  %v39_v24 = vld [vmem:[%s1462_s0 + $0x40] sm:$0xff]  ;;  %v42_v26 = vld [vmem:[%s1462_s0 + $0x58] sm:$0xff]  ;;  %v1115_v6 = vld [vmem:[%s1464_s5 + $0x8] sm:$0xff]  }
   0x9   :  { %971 = vmatprep.subr.bf16.mxu1 %v1108_v8  ;;  %v46_v27 = vld [vmem:[%s1462_s0 + $0x78] sm:$0xff]  ;;  %v1114_v37 = vld [vmem:[%s1464_s5] sm:$0xff]  }
   0xa   :  { %1083 = vset.pattern.permute.xlu1 %v1127_v1  ;;  %56 = vperm.xlu0 %1081, %v33_v4  }
   0xb   :  { %59 = vperm.xlu1 %1083, %v34_v5  }
   0xc   :  { %972 = vmatpush3.bf16.msra.mxu1 %v1108_v8  ;;  %v1116_v8 = vld [vmem:[%s1464_s5 + $0x10] sm:$0xff]  }
   0xd   :  { %973 = vmatprep.subr.bf16.mxu1 %v1109_v10 }
   0xe   :  { %1084 = vset.pattern.permute.xlu0 %v1126_v0 }
   0xf   :  { %1085 = vset.pattern.permute.xlu1 %v1126_v0  ;;  %152 = vperm.xlu0 %1084, %v33_v4  }
  0x10   :  { %155 = vperm.xlu1 %1085, %v34_v5   ;;  %974 = vmatpush3.bf16.msra.mxu1 %v1109_v10 }
  0x11   :  { %975 = vmatprep.subr.bf16.mxu1 %v1110_v13 }
  0x13   :  { %161 = vperm.xlu0 %1084, %v36_v9  }
  0x14   :  { %1086 = vset.pattern.permute.xlu1 %v1128_v11  ;;  %976 = vmatpush3.bf16.msra.mxu1 %v1110_v13  ;;  %v1118_v13 = vld [vmem:[%s1464_s5 + $0x20] sm:$0xff]  }
  0x15   :  { %242 = vperm.xlu1 %1086, %v31_v2   ;;  %977 = vmatprep.subr.bf16.mxu1 %v1111_v14 }
  0x17   :  { %164 = vperm.xlu0 %1084, %v37_v12  }
  0x18   :  { %978 = vmatpush3.bf16.msra.mxu1 %v1111_v14 }
  0x19   :  { %248 = vperm.xlu1 %1086, %v33_v4   ;;  %979 = vmatprep.subr.bf16.mxu1 %v1112_v16 }
  0x1b   :  { %1090 = vset.pattern.permute.xlu0 %v1128_v11 }
  0x1c   :  { %245 = vperm.xlu0 %1090, %v32_v3   ;;  %980 = vmatpush3.bf16.msra.mxu1 %v1112_v16  ;;  %v1119_v16 = vld [vmem:[%s1464_s5 + $0x28] sm:$0xff]  }
  0x1d   :  { %251 = vperm.xlu1 %1086, %v34_v5   ;;  %981 = vmatprep.subr.bf16.mxu1 %v1113_v18 }
  0x20   :  { %254 = vperm.xlu0 %1090, %v35_v15   ;;  %982 = vmatpush3.bf16.msra.mxu1 %v1113_v18 }
  0x21   :  { %1087 = vset.pattern.permute.xlu1 %v1127_v1  ;;  %999 = vmatprep.subr.bf16.mxu1 %v1114_v37 }
  0x22   :  { %65 = vperm.xlu1 %1087, %v36_v9  }
  0x24   :  { %263 = vperm.xlu0 %1090, %v38_v17  }
  0x26   :  { %1088 = vset.pattern.permute.xlu1 %v1126_v0 }
  0x27   :  { %158 = vperm.xlu1 %1088, %v35_v15  }
  0x28   :  { %269 = vperm.xlu0 %1090, %v40_v20  }
  0x2b   :  { %1089 = vset.pattern.permute.xlu1 %v1127_v1 }
  0x2c   :  { %68 = vperm.xlu1 %1089, %v37_v12   ;;  %1098 = vset.pattern.permute.xlu0 %v1127_v1 }
  0x2d   :  { %62 = vperm.xlu0 %1098, %v35_v15  }
  0x30   :  { %71 = vperm.xlu1 %1089, %v38_v17  }
  0x31   :  { %77 = vperm.xlu0 %1098, %v40_v20  }
  0x34   :  { %1091 = vset.pattern.permute.xlu1 %v1126_v0 }
  0x35   :  { %167 = vperm.xlu1 %1091, %v38_v17   ;;  %80 = vperm.xlu0 %1098, %v41_v21  }
  0x39   :  { %1092 = vset.pattern.permute.xlu1 %v1128_v11  ;;  %86 = vperm.xlu0 %1098, %v43_v22  }
  0x3a   :  { %257 = vperm.xlu1 %1092, %v36_v9  }
  0x3d   :  { %1099 = vset.pattern.permute.xlu0 %v1126_v0 }
  0x3e   :  { %260 = vperm.xlu1 %1092, %v37_v12   ;;  %176 = vperm.xlu0 %1099, %v41_v21  }
  0x42   :  { %1093 = vset.pattern.permute.xlu1 %v1127_v1  ;;  %185 = vperm.xlu0 %1099, %v44_v23  }
  0x43   :  { %74 = vperm.xlu1 %1093, %v39_v24  }
  0x46   :  { %188 = vperm.xlu0 %1099, %v45_v25  }
  0x47   :  { %1094 = vset.pattern.permute.xlu1 %v1126_v0 }
  0x48   :  { %170 = vperm.xlu1 %1094, %v39_v24  }
  0x4a   :  { %1104 = vset.pattern.permute.xlu0 %v1128_v11 }
  0x4b   :  { %278 = vperm.xlu0 %1104, %v43_v22  }
  0x4c   :  { %173 = vperm.xlu1 %1094, %v40_v20  }
  0x4f   :  { %287 = vperm.xlu0 %1104, %v46_v27  }
  0x50   :  { %1095 = vset.pattern.permute.xlu1 %v1127_v1 }
  0x51   :  { %83 = vperm.xlu1 %1095, %v42_v26  }
  0x55   :  { %1096 = vset.pattern.permute.xlu1 %v1126_v0 }
  0x56   :  { %179 = vperm.xlu1 %1096, %v42_v26  }
  0x5a   :  { %1097 = vset.pattern.permute.xlu1 %v1128_v11 }
  0x5b   :  { %266 = vperm.xlu1 %1097, %v39_v24  }
  0x5f   :  { %272 = vperm.xlu1 %1097, %v41_v21  }
  0x63   :  { %275 = vperm.xlu1 %1097, %v42_v26  }
  0x67   :  { %1100 = vset.pattern.permute.xlu1 %v1127_v1 }
  0x68   :  { %89 = vperm.xlu1 %1100, %v44_v23  }
  0x6c   :  { %1101 = vset.pattern.permute.xlu1 %v1126_v0 }
  0x6d   :  { %182 = vperm.xlu1 %1101, %v43_v22  }
  0x71   :  { %1102 = vset.pattern.permute.xlu1 %v1127_v1 }
  0x72   :  { %92 = vperm.xlu1 %1102, %v45_v25  }
  0x76   :  { %95 = vperm.xlu1 %1102, %v46_v27  }
  0x7a   :  { %1103 = vset.pattern.permute.xlu1 %v1126_v0 }
  0x7b   :  { %191 = vperm.xlu1 %1103, %v46_v27  }
  0x7f   :  { %1105 = vset.pattern.permute.xlu1 %v1128_v11  ;;  %v1117_v11 = vld [vmem:[%s1464_s5 + $0x18] sm:$0xff]  }
  0x80   :  { %281 = vperm.xlu1 %1105, %v44_v23  }
  0x81   :  { %v147_v28 = vpop.permute.xlu1 %146  ;;  %v51_v29 = vpop.permute.xlu0 %50 }
  0x82   :  { %vm193_vm0 = vcmp.eq.s32.totalorder %v147_v28, %v1278_v38  ;;  %vm97_vm1 = vcmp.eq.s32.totalorder %v51_v29, %v1278_v38 }
  0x83   :  { %v209_v43 = vsel %vm193_vm0, 1.0, %v1130_v42  ;;  %v113_v44 = vsel %vm97_vm1, 1.0, %v1130_v42 }
  0x84   :  { %284 = vperm.xlu1 %1105, %v45_v25   ;;  %v225_v51 = vadd.f32 %v209_v43, %v113_v44 }
  0x85   :  { %v150_v30 = vpop.permute.xlu1 %149  ;;  %v54_v31 = vpop.permute.xlu0 %53 }
  0x86   :  { %vm194_vm4 = vcmp.eq.s32.totalorder %v150_v30, %v1278_v38  ;;  %vm98_vm5 = vcmp.eq.s32.totalorder %v54_v31, %v1278_v38 }
  0x87   :  { %v210_v48 = vsel %vm194_vm4, 1.0, %v1130_v42  ;;  %v114_v49 = vsel %vm98_vm5, 1.0, %v1130_v42 }
  0x88   :  { %v226_v55 = vadd.f32 %v210_v48, %v114_v49 }
  0x89   :  { %v57_v32 = vpop.permute.xlu0 %56 }
  0x8a   :  { %v60_v33 = vpop.permute.xlu1 %59  ;;  %vm99_vm2 = vcmp.eq.s32.totalorder %v57_v32, %v1278_v38 }
  0x8b   :  { %v115_v45 = vsel %vm99_vm2, 1.0, %v1130_v42  ;;  %vm100_vm8 = vcmp.eq.s32.totalorder %v60_v33, %v1278_v38 }
  0x8c   :  { %v116_v56 = vsel %vm100_vm8, 1.0, %v1130_v42 }
  0x8e   :  { %v153_v35 = vpop.permute.xlu0 %152 }
  0x8f   :  { %v156_v36 = vpop.permute.xlu1 %155  ;;  %vm195_vm3 = vcmp.eq.s32.totalorder %v153_v35, %v1278_v38 }
  0x90   :  { %vm196_vm6 = vcmp.eq.s32.totalorder %v156_v36, %v1278_v38  ;;  %v211_v46 = vsel %vm195_vm3, 1.0, %v1130_v42 }
  0x91   :  { %v212_v50 = vsel %vm196_vm6, 1.0, %v1130_v42  ;;  %v227_v52 = vadd.f32 %v211_v46, %v115_v45 }
  0x92   :  { %v1280_v39 = vpop.permute.xlu0 %161  ;;  %v228_v59 = vadd.f32 %v212_v50, %v116_v56 }
  0x93   :  { %vm198_vm13 = vcmp.eq.s32.totalorder %v1280_v39, %v1278_v38 }
  0x94   :  { %v243_v40 = vpop.permute.xlu1 %242  ;;  %v214_v20 = vsel %vm198_vm13, 1.0, %v1130_v42 }
  0x95   :  { %vm289_vm7 = vcmp.eq.s32.totalorder %v243_v40, %v1278_v38 }
  0x96   :  { %v1288_v41 = vpop.permute.xlu0 %164  ;;  %v305_v53 = vsel %vm289_vm7, 1.0, %v1130_v42 }
  0x97   :  { %v321_v61 = vadd.f32 %v305_v53, %v225_v51  ;;  %vm199_vm2 = vcmp.eq.s32.totalorder %v1288_v41, %v1278_v38 }
  0x98   :  { %v249_v47 = vpop.permute.xlu1 %248  ;;  %v215_v28 = vsel %vm199_vm2, 1.0, %v1130_v42 }
  0x99   :  { %vm291_vm9 = vcmp.eq.s32.totalorder %v249_v47, %v1278_v38 }
  0x9a   :  { %v307_v57 = vsel %vm291_vm9, 1.0, %v1130_v42 }
  0x9b   :  { %v246_v54 = vpop.permute.xlu0 %245  ;;  %v323_v0 = vadd.f32 %v307_v57, %v227_v52 }
  0x9c   :  { %vm290_vm10 = vcmp.eq.s32.totalorder %v246_v54, %v1278_v38  ;;  %v252_v58 = vpop.permute.xlu1 %251 }
  0x9d   :  { %v306_v60 = vsel %vm290_vm10, 1.0, %v1130_v42  ;;  %vm292_vm11 = vcmp.eq.s32.totalorder %v252_v58, %v1278_v38 }
  0x9e   :  { %v322_v62 = vadd.f32 %v306_v60, %v226_v55  ;;  %v308_v63 = vsel %vm292_vm11, 1.0, %v1130_v42 }
  0x9f   :  { %v324_v1 = vadd.f32 %v308_v63, %v228_v59  ;;  %v255_v2 = vpop.permute.xlu0 %254 }
  0xa0   :  { %v1052_v3 = vpack.c.bf16 %v322_v62, %v321_v61  ;;  %vm293_vm0 = vcmp.eq.s32.totalorder %v255_v2, %v1278_v38 }
  0xa1   :  { %v66_v4 = vpop.permute.xlu1 %65  ;;  %v1055_v5 = vpack.c.bf16 %v324_v1, %v323_v0  ;;  %v309_v24 = vsel %vm293_vm0, 1.0, %v1130_v42 }
  0xa2   :  { %1053 = vmatpush3.bf16.xpose.msra.mxu0 %v1052_v3  ;;  %983 = vmatprep.mubr.bf16.mxu1 %v1052_v3  ;;  %vm102_vm14 = vcmp.eq.s32.totalorder %v66_v4, %v1278_v38 }
  0xa3   :  { %984 = vmatmul.mubr.bf16.vlgmr.msra.gmra.mrb[0].mxu1 %v1055_v5  ;;  %v264_v7 = vpop.permute.xlu0 %263  ;;  %1054 = vmatprep.subr.bf16.mxu0 %v1129_v19  ;;  %v118_v21 = vsel %vm102_vm14, 1.0, %v1130_v42 }
  0xa4   :  { %1000 = vmatpush3.bf16.msra.mxu1 %v1114_v37  ;;  %v230_v27 = vadd.f32 %v214_v20, %v118_v21  ;;  %vm296_vm5 = vcmp.eq.s32.totalorder %v264_v7, %v1278_v38 }
  0xa5   :  { %1001 = vmatprep.subr.bf16.mxu1 %v1115_v6  ;;  %v312_v35 = vsel %vm296_vm5, 1.0, %v1130_v42 }
  0xa6   :  { %v159_v9 = vpop.permute.xlu1 %158 }
  0xa7   :  { %v1315_v10 = vpop.permute.xlu0 %269  ;;  %vm197_vm15 = vcmp.eq.s32.totalorder %v159_v9, %v1278_v38 }
  0xa8   :  { %1002 = vmatpush3.bf16.msra.mxu1 %v1115_v6  ;;  %v213_v22 = vsel %vm197_vm15, 1.0, %v1130_v42  ;;  %vm298_vm11 = vcmp.eq.s32.totalorder %v1315_v10, %v1278_v38 }
  0xa9   :  { %1003 = vmatprep.subr.bf16.mxu1 %v1116_v8  ;;  %v314_v58 = vsel %vm298_vm11, 1.0, %v1130_v42 }
  0xaa   :  { %1056 = vmatpush3.bf16.xpose.msra.mxu0 %v1055_v5 }
  0xab   :  { %v69_v12 = vpop.permute.xlu1 %68  ;;  %1057 = vmatprep.subr.bf16.mxu0 %v1129_v19 }
  0xac   :  { %1004 = vmatpush3.bf16.msra.mxu1 %v1116_v8  ;;  %v63_v14 = vpop.permute.xlu0 %62  ;;  %vm103_vm3 = vcmp.eq.s32.totalorder %v69_v12, %v1278_v38 }
  0xad   :  { %1005 = vmatprep.subr.bf16.mxu1 %v1117_v11  ;;  %vm101_vm12 = vcmp.eq.s32.totalorder %v63_v14, %v1278_v38  ;;  %v119_v29 = vsel %vm103_vm3, 1.0, %v1130_v42 }
  0xae   :  { %v117_v18 = vsel %vm101_vm12, 1.0, %v1130_v42  ;;  %v231_v37 = vadd.f32 %v215_v28, %v119_v29 }
  0xaf   :  { %v72_v15 = vpop.permute.xlu1 %71  ;;  %v229_v23 = vadd.f32 %v213_v22, %v117_v18  ;;  %v1120_v22 = vld [vmem:[%s1464_s5 + $0x30] sm:$0xff]  }
  0xb0   :  { %1006 = vmatpush3.bf16.msra.mxu1 %v1117_v11  ;;  %vm104_vm4 = vcmp.eq.s32.totalorder %v72_v15, %v1278_v38  ;;  %v78_v47 = vpop.permute.xlu0 %77 }
  0xb1   :  { %1007 = vmatprep.subr.bf16.mxu1 %v1118_v13  ;;  %v120_v30 = vsel %vm104_vm4, 1.0, %v1130_v42  ;;  %v325_v32 = vadd.f32 %v309_v24, %v229_v23  ;;  %vm106_vm9 = vcmp.eq.s32.totalorder %v78_v47, %v1278_v38 }
  0xb2   :  { %v122_v54 = vsel %vm106_vm9, 1.0, %v1130_v42 }
  0xb4   :  { %v168_v17 = vpop.permute.xlu1 %167  ;;  %1008 = vmatpush3.bf16.msra.mxu1 %v1118_v13  ;;  %v81_v49 = vpop.permute.xlu0 %80 }
  0xb5   :  { %1009 = vmatprep.subr.bf16.mxu1 %v1119_v16  ;;  %vm200_vm1 = vcmp.eq.s32.totalorder %v168_v17, %v1278_v38  ;;  %vm107_vm13 = vcmp.eq.s32.totalorder %v81_v49, %v1278_v38 }
  0xb6   :  { %v216_v25 = vsel %vm200_vm1, 1.0, %v1130_v42  ;;  %v123_v1 = vsel %vm107_vm13, 1.0, %v1130_v42 }
  0xb7   :  { %v232_v33 = vadd.f32 %v216_v25, %v120_v30 }
  0xb8   :  { %1010 = vmatpush3.bf16.msra.mxu1 %v1119_v16  ;;  %v1355_v51 = vpop.permute.xlu0 %86 }
  0xb9   :  { %v258_v26 = vpop.permute.xlu1 %257  ;;  %v328_v41 = vadd.f32 %v312_v35, %v232_v33  ;;  %1011 = vmatprep.subr.bf16.mxu1 %v1120_v22  ;;  %vm109_vm5 = vcmp.eq.s32.totalorder %v1355_v51, %v1278_v38 }
  0xba   :  { %vm294_vm6 = vcmp.eq.s32.totalorder %v258_v26, %v1278_v38  ;;  %v1121_v26 = vld [vmem:[%s1464_s5 + $0x38] sm:$0xff]  }
  0xbb   :  { %v310_v31 = vsel %vm294_vm6, 1.0, %v1130_v42 }
  0xbc   :  { %v326_v34 = vadd.f32 %v310_v31, %v230_v27  ;;  %1012 = vmatpush3.bf16.msra.mxu1 %v1120_v22  ;;  %v125_v27 = vsel %vm109_vm5, 1.0, %v1130_v42 }
  0xbd   :  { %v261_v36 = vpop.permute.xlu1 %260  ;;  %v177_v56 = vpop.permute.xlu0 %176  ;;  %1013 = vmatprep.subr.bf16.mxu1 %v1121_v26 }
  0xbe   :  { %vm295_vm7 = vcmp.eq.s32.totalorder %v261_v36, %v1278_v38  ;;  %v1058_v39 = vpack.c.bf16 %v326_v34, %v325_v32  ;;  %vm203_vm15 = vcmp.eq.s32.totalorder %v177_v56, %v1278_v38 }
  0xbf   :  { %v311_v40 = vsel %vm295_vm7, 1.0, %v1130_v42  ;;  %v219_v2 = vsel %vm203_vm15, 1.0, %v1130_v42 }
  0xc0   :  { %v327_v43 = vadd.f32 %v311_v40, %v231_v37  ;;  %1059 = vmatpush3.bf16.xpose.msra.mxu0 %v1058_v39  ;;  %987 = vmatprep.mubr.bf16.mxu1 %v1058_v39  ;;  %v235_v6 = vadd.f32 %v219_v2, %v123_v1 }
  0xc1   :  { %1060 = vmatprep.subr.bf16.mxu0 %v1129_v19  ;;  %v186_v17 = vpop.permute.xlu0 %185  ;;  %1014 = vmatpush3.bf16.msra.mxu1 %v1121_v26 }
  0xc2   :  { %v75_v44 = vpop.permute.xlu1 %74  ;;  %v1061_v45 = vpack.c.bf16 %v328_v41, %v327_v43  ;;  %vm206_vm6 = vcmp.eq.s32.totalorder %v186_v17, %v1278_v38 }
  0xc3   :  { %vm105_vm12 = vcmp.eq.s32.totalorder %v75_v44, %v1278_v38  ;;  %v222_v28 = vsel %vm206_vm6, 1.0, %v1130_v42 }
  0xc4   :  { %988 = vmatmul.mubr.bf16.gmra.mrb[4].mxu1 %v1061_v45  ;;  %v121_v59 = vsel %vm105_vm12, 1.0, %v1130_v42 }
  0xc5   :  { %v189_v20 = vpop.permute.xlu0 %188 }
  0xc7   :  { %v171_v46 = vpop.permute.xlu1 %170 }
  0xc8   :  { %1062 = vmatpush3.bf16.xpose.msra.mxu0 %v1061_v45  ;;  %vm201_vm10 = vcmp.eq.s32.totalorder %v171_v46, %v1278_v38 }
  0xc9   :  { %1063 = vmatprep.subr.bf16.mxu0 %v1129_v19  ;;  %v217_v55 = vsel %vm201_vm10, 1.0, %v1130_v42  ;;  %vm207_vm10 = vcmp.eq.s32.totalorder %v189_v20, %v1278_v38 }
  0xca   :  { %v233_v61 = vadd.f32 %v217_v55, %v121_v59  ;;  %v279_v23 = vpop.permute.xlu0 %278  ;;  %v223_v36 = vsel %vm207_vm10, 1.0, %v1130_v42 }
  0xcb   :  { %v174_v48 = vpop.permute.xlu1 %173 }
  0xcc   :  { %vm202_vm8 = vcmp.eq.s32.totalorder %v174_v48, %v1278_v38 }
  0xcd   :  { %v218_v53 = vsel %vm202_vm8, 1.0, %v1130_v42  ;;  %vm301_vm8 = vcmp.eq.s32.totalorder %v279_v23, %v1278_v38 }
  0xce   :  { %v234_v57 = vadd.f32 %v218_v53, %v122_v54  ;;  %v288_v30 = vpop.permute.xlu0 %287  ;;  %v317_v32 = vsel %vm301_vm8, 1.0, %v1130_v42  ;;  %v855_v53 = vld [vmem:[%s1465_s4] ss:$0 sm:$0xff] }
  0xcf   :  { %vm304_vm13 = vcmp.eq.s32.totalorder %v288_v30, %v1278_v38 }
  0xd0   :  { %v84_v50 = vpop.permute.xlu1 %83  ;;  %v330_v63 = vadd.f32 %v314_v58, %v234_v57  ;;  %v320_v45 = vsel %vm304_vm13, 1.0, %v1130_v42 }
  0xd1   :  { %vm108_vm1 = vcmp.eq.s32.totalorder %v84_v50, %v1278_v38 }
  0xd2   :  { %v124_v7 = vsel %vm108_vm1, 1.0, %v1130_v42 }
  0xd5   :  { %v180_v52 = vpop.permute.xlu1 %179 }
  0xd6   :  { %vm204_vm0 = vcmp.eq.s32.totalorder %v180_v52, %v1278_v38 }
  0xd7   :  { %v220_v5 = vsel %vm204_vm0, 1.0, %v1130_v42  ;;  %vm1131_vm0 = vmmov 0  }
  0xd8   :  { %v236_v10 = vadd.f32 %v220_v5, %v124_v7  ;;  %964 = vmatprep.mubr.msk.f32.mxu0 %vm1131_vm0, %v1130_v42 }
  0xda   :  { %v267_v60 = vpop.permute.xlu1 %266 }
  0xdb   :  { %vm297_vm14 = vcmp.eq.s32.totalorder %v267_v60, %v1278_v38 }
  0xdc   :  { %v313_v62 = vsel %vm297_vm14, 1.0, %v1130_v42 }
  0xdd   :  { %v329_v0 = vadd.f32 %v313_v62, %v233_v61 }
  0xde   :  { %v273_v3 = vpop.permute.xlu1 %272 }
  0xdf   :  { %vm299_vm2 = vcmp.eq.s32.totalorder %v273_v3, %v1278_v38  ;;  %v1064_v4 = vpack.c.bf16 %v330_v63, %v329_v0 }
  0xe0   :  { %v315_v8 = vsel %vm299_vm2, 1.0, %v1130_v42 }
  0xe1   :  { %1065 = vmatpush3.bf16.xpose.msra.mxu0 %v1064_v4  ;;  %991 = vmatprep.mubr.bf16.mxu1 %v1064_v4  ;;  %v331_v12 = vadd.f32 %v315_v8, %v235_v6 }
  0xe2   :  { %v276_v9 = vpop.permute.xlu1 %275  ;;  %1066 = vmatprep.subr.bf16.mxu0 %v1129_v19 }
  0xe3   :  { %vm300_vm3 = vcmp.eq.s32.totalorder %v276_v9, %v1278_v38 }
  0xe4   :  { %v316_v11 = vsel %vm300_vm3, 1.0, %v1130_v42 }
  0xe5   :  { %v332_v13 = vadd.f32 %v316_v11, %v236_v10 }
  0xe7   :  { %v90_v14 = vpop.permute.xlu1 %89  ;;  %v1067_v15 = vpack.c.bf16 %v332_v13, %v331_v12 }
  0xe8   :  { %vm110_vm7 = vcmp.eq.s32.totalorder %v90_v14, %v1278_v38 }
  0xe9   :  { %1068 = vmatpush3.bf16.xpose.msra.mxu0 %v1067_v15  ;;  %992 = vmatmul.mubr.bf16.gmra.mrb[8].mxu1 %v1067_v15  ;;  %v126_v29 = vsel %vm110_vm7, 1.0, %v1130_v42 }
  0xea   :  { %1069 = vmatprep.subr.bf16.mxu0 %v1129_v19  ;;  %v238_v35 = vadd.f32 %v222_v28, %v126_v29 }
  0xec   :  { %v183_v16 = vpop.permute.xlu1 %182 }
  0xed   :  { %vm205_vm4 = vcmp.eq.s32.totalorder %v183_v16, %v1278_v38 }
  0xee   :  { %v221_v25 = vsel %vm205_vm4, 1.0, %v1130_v42 }
  0xef   :  { %v237_v31 = vadd.f32 %v221_v25, %v125_v27 }
  0xf1   :  { %v93_v18 = vpop.permute.xlu1 %92  ;;  %v333_v41 = vadd.f32 %v317_v32, %v237_v31  ;;  %v337_v32 = vld [vmem:[%s1466_s3] sm:$0x1] }
  0xf2   :  { %vm111_vm11 = vcmp.eq.s32.totalorder %v93_v18, %v1278_v38 }
  0xf3   :  { %v127_v37 = vsel %vm111_vm11, 1.0, %v1130_v42 }
  0xf4   :  { %v239_v47 = vadd.f32 %v223_v36, %v127_v37 }
  0xf5   :  { %v96_v21 = vpop.permute.xlu1 %95 }
  0xf6   :  { %vm112_vm12 = vcmp.eq.s32.totalorder %v96_v21, %v1278_v38 }
  0xf7   :  { %v128_v39 = vsel %vm112_vm12, 1.0, %v1130_v42 }
  0xfa   :  { %v192_v24 = vpop.permute.xlu1 %191 }
  0xfb   :  { %vm208_vm9 = vcmp.eq.s32.totalorder %v192_v24, %v1278_v38 }
  0xfc   :  { %v224_v33 = vsel %vm208_vm9, 1.0, %v1130_v42 }
  0xfd   :  { %v240_v43 = vadd.f32 %v224_v33, %v128_v39 }
  0xff   :  { %v282_v34 = vpop.permute.xlu1 %281  ;;  %v336_v50 = vadd.f32 %v320_v45, %v240_v43 }
 0x100   :  { %vm302_vm14 = vcmp.eq.s32.totalorder %v282_v34, %v1278_v38 }
 0x101   :  { %v318_v40 = vsel %vm302_vm14, 1.0, %v1130_v42 }
 0x102   :  { %v334_v44 = vadd.f32 %v318_v40, %v238_v35 }
 0x103   :  { %v285_v46 = vpop.permute.xlu1 %284 }
 0x104   :  { %vm303_vm15 = vcmp.eq.s32.totalorder %v285_v46, %v1278_v38  ;;  %v1070_v48 = vpack.c.bf16 %v334_v44, %v333_v41 }
 0x105   :  { %v319_v49 = vsel %vm303_vm15, 1.0, %v1130_v42 }
 0x106   :  { %v335_v51 = vadd.f32 %v319_v49, %v239_v47  ;;  %1071 = vmatpush3.bf16.xpose.msra.mxu0 %v1070_v48  ;;  %995 = vmatprep.mubr.bf16.mxu1 %v1070_v48  ;;  %v1428_v48 = vld [vmem:[%s1467_s6] ss:$0 sm:$0xff] }
 0x107   :  { %1072 = vmatprep.subr.bf16.mxu0 %v1129_v19 }
 0x108   :  { %v1073_v52 = vpack.c.bf16 %v336_v50, %v335_v51 }
 0x10a   :  { %996 = vmatmul.mubr.bf16.gmra.mrb[12].mxu1 %v1073_v52 }
 0x10e   :  { %1074 = vmatpush3.bf16.xpose.msra.mxu0 %v1073_v52 }
 0x10f   :  { %1031 = vmatprep.subr.bf16.mxu0 %v1130_v42 }
 0x115   :  { %965 = vmatmul.mubr.f32.vlgmr.msra.gmra.mrb[0].mxu0 %v337_v32 }
 0x116   :  { %1047 = vmatprep.mubr.msk.bf16.mxu0 %vm1131_vm0, %v1130_v42 }
 0x176   :  { %v985_v54 = vpop.f32.mrb[0].mxu1 }
 0x177   :  { %v530_v38 = vadd.f32 %v985_v54, %v855_v53  ;;  %v521_v55 = vpop.f32.mrb[1].mxu1 }
 0x178   :  { %v522_v56 = vadd.f32 %v855_v53, %v521_v55  ;;  %v986_v57 = vpop.f32.mrb[2].mxu1 }
 0x179   :  { %v533_v58 = vadd.f32 %v986_v57, %v855_v53  ;;  %v524_v59 = vpop.f32.mrb[3].mxu1  ;;  %v586_v61 = vmax.f32 %v530_v38, 0.0 }
 0x17a   :  { %v525_v60 = vadd.f32 %v855_v53, %v524_v59  ;;  %v584_v19 = vmax.f32 %v522_v56, 0.0 }
 0x17b   :  { %v587_v62 = vmax.f32 %v533_v58, 0.0 }
 0x17c   :  { %v585_v63 = vmax.f32 %v525_v60, 0.0 }
 0x17d   :  { %v601_v0 = vpack.c.bf16 %v587_v62, %v586_v61 }
 0x17e   :  { %v600_v1 = vpack.c.bf16 %v585_v63, %v584_v19 }
 0x180   :  { %1015 = vmatprep.mubr.bf16.mxu1 %v600_v1 }
 0x181   :  { %1016 = vmatmul.mubr.bf16.vlgmr.msra.gmra.mrb[16].mxu1 %v601_v0 }
 0x197   :  { %v989_v2 = vpop.f32.mrb[4].mxu1 }
 0x198   :  { %v546_v3 = vadd.f32 %v989_v2, %v855_v53  ;;  %v537_v4 = vpop.f32.mrb[5].mxu1 }
 0x199   :  { %v538_v5 = vadd.f32 %v855_v53, %v537_v4  ;;  %v990_v6 = vpop.f32.mrb[6].mxu1 }
 0x19a   :  { %v549_v7 = vadd.f32 %v990_v6, %v855_v53  ;;  %v540_v8 = vpop.f32.mrb[7].mxu1  ;;  %v590_v10 = vmax.f32 %v546_v3, 0.0 }
 0x19b   :  { %v541_v9 = vadd.f32 %v855_v53, %v540_v8  ;;  %v588_v12 = vmax.f32 %v538_v5, 0.0 }
 0x19c   :  { %v591_v11 = vmax.f32 %v549_v7, 0.0 }
 0x19d   :  { %v589_v13 = vmax.f32 %v541_v9, 0.0 }
 0x19e   :  { %v603_v14 = vpack.c.bf16 %v591_v11, %v590_v10 }
 0x19f   :  { %v602_v15 = vpack.c.bf16 %v589_v13, %v588_v12 }
 0x1a1   :  { %1019 = vmatprep.mubr.bf16.mxu1 %v602_v15 }
 0x1a2   :  { %1020 = vmatmul.mubr.bf16.gmra.mrb[20].mxu1 %v603_v14 }
 0x1bc   :  { %v993_v16 = vpop.f32.mrb[8].mxu1 }
 0x1bd   :  { %v562_v17 = vadd.f32 %v993_v16, %v855_v53  ;;  %v553_v18 = vpop.f32.mrb[9].mxu1 }
 0x1be   :  { %v554_v20 = vadd.f32 %v855_v53, %v553_v18  ;;  %v994_v21 = vpop.f32.mrb[10].mxu1 }
 0x1bf   :  { %v565_v22 = vadd.f32 %v994_v21, %v855_v53  ;;  %v556_v23 = vpop.f32.mrb[11].mxu1  ;;  %v594_v25 = vmax.f32 %v562_v17, 0.0 }
 0x1c0   :  { %v557_v24 = vadd.f32 %v855_v53, %v556_v23  ;;  %v592_v27 = vmax.f32 %v554_v20, 0.0 }
 0x1c1   :  { %v595_v26 = vmax.f32 %v565_v22, 0.0 }
 0x1c2   :  { %v593_v28 = vmax.f32 %v557_v24, 0.0 }
 0x1c3   :  { %v605_v29 = vpack.c.bf16 %v595_v26, %v594_v25 }
 0x1c4   :  { %v604_v30 = vpack.c.bf16 %v593_v28, %v592_v27 }
 0x1c6   :  { %1023 = vmatprep.mubr.bf16.mxu1 %v604_v30 }
 0x1c7   :  { %1024 = vmatmul.mubr.bf16.gmra.mrb[24].mxu1 %v605_v29 }
 0x1dd   :  { %v997_v31 = vpop.f32.mrb[12].mxu1 }
 0x1de   :  { %v578_v33 = vadd.f32 %v997_v31, %v855_v53  ;;  %v569_v34 = vpop.f32.mrb[13].mxu1 }
 0x1df   :  { %v570_v35 = vadd.f32 %v855_v53, %v569_v34  ;;  %v998_v36 = vpop.f32.mrb[14].mxu1 }
 0x1e0   :  { %v581_v37 = vadd.f32 %v998_v36, %v855_v53  ;;  %v572_v39 = vpop.f32.mrb[15].mxu1  ;;  %v598_v41 = vmax.f32 %v578_v33, 0.0 }
 0x1e1   :  { %v573_v40 = vadd.f32 %v855_v53, %v572_v39  ;;  %v596_v44 = vmax.f32 %v570_v35, 0.0 }
 0x1e2   :  { %v599_v43 = vmax.f32 %v581_v37, 0.0 }
 0x1e3   :  { %v597_v45 = vmax.f32 %v573_v40, 0.0 }
 0x1e4   :  { %v607_v46 = vpack.c.bf16 %v599_v43, %v598_v41 }
 0x1e5   :  { %v606_v47 = vpack.c.bf16 %v597_v45, %v596_v44  ;;  %v792_v44 = vld [vmem:[%s1468_s7] sm:$0x1] }
 0x1e7   :  { %1027 = vmatprep.mubr.bf16.mxu1 %v606_v47 }
 0x1e8   :  { %1028 = vmatmul.mubr.bf16.gmra.mrb[28].mxu1 %v607_v46  ;;  %v404_v26 = vpop.f32.mrb[0].mxu0  ;;  %v842_v46 = vstv %s1469_s1 }
 0x1e9   :  { %v966_v27 = vpop.f32.mrb[1].mxu0 }
 0x254   :  { %v1017_v49 = vpop.f32.mrb[16].mxu1 }
 0x255   :  { %v722_v50 = vadd.f32 %v1017_v49, %v1428_v48  ;;  %v713_v51 = vpop.f32.mrb[17].mxu1 }
 0x256   :  { %v714_v52 = vadd.f32 %v1428_v48, %v713_v51  ;;  %v1018_v53 = vpop.f32.mrb[18].mxu1 }
 0x257   :  { %v725_v54 = vadd.f32 %v1018_v53, %v1428_v48  ;;  %v716_v38 = vpop.f32.mrb[19].mxu1  ;;  %v778_v56 = vmax.f32 %v722_v50, 0.0 }
 0x258   :  { %v717_v55 = vadd.f32 %v1428_v48, %v716_v38  ;;  %v776_v58 = vmax.f32 %v714_v52, 0.0 }
 0x259   :  { %v779_v57 = vmax.f32 %v725_v54, 0.0 }
 0x25a   :  { %v777_v59 = vmax.f32 %v717_v55, 0.0 }
 0x25b   :  { %v794_v60 = vpack.c.bf16 %v779_v57, %v778_v56 }
 0x25c   :  { %v793_v61 = vpack.c.bf16 %v777_v59, %v776_v58 }
 0x25e   :  { %1032 = vmatpush3.bf16.xpose.msra.mxu0 %v793_v61 }
 0x25f   :  { %1033 = vmatprep.subr.bf16.mxu0 %v1130_v42 }
 0x266   :  { %1034 = vmatpush3.bf16.xpose.msra.mxu0 %v794_v60 }
 0x267   :  { %1035 = vmatprep.subr.bf16.mxu0 %v1130_v42 }
 0x275   :  { %v1021_v62 = vpop.f32.mrb[20].mxu1 }
 0x276   :  { %v738_v19 = vadd.f32 %v1021_v62, %v1428_v48  ;;  %v729_v63 = vpop.f32.mrb[21].mxu1 }
 0x277   :  { %v730_v0 = vadd.f32 %v1428_v48, %v729_v63  ;;  %v1022_v1 = vpop.f32.mrb[22].mxu1 }
 0x278   :  { %v741_v2 = vadd.f32 %v1022_v1, %v1428_v48  ;;  %v732_v3 = vpop.f32.mrb[23].mxu1  ;;  %v782_v5 = vmax.f32 %v738_v19, 0.0 }
 0x279   :  { %v733_v4 = vadd.f32 %v1428_v48, %v732_v3  ;;  %v780_v7 = vmax.f32 %v730_v0, 0.0 }
 0x27a   :  { %v783_v6 = vmax.f32 %v741_v2, 0.0 }
 0x27b   :  { %v781_v8 = vmax.f32 %v733_v4, 0.0 }
 0x27c   :  { %v796_v9 = vpack.c.bf16 %v783_v6, %v782_v5 }
 0x27d   :  { %v795_v10 = vpack.c.bf16 %v781_v8, %v780_v7 }
 0x27f   :  { %1036 = vmatpush3.bf16.xpose.msra.mxu0 %v795_v10 }
 0x280   :  { %1037 = vmatprep.subr.bf16.mxu0 %v1130_v42 }
 0x287   :  { %1038 = vmatpush3.bf16.xpose.msra.mxu0 %v796_v9 }
 0x288   :  { %1039 = vmatprep.subr.bf16.mxu0 %v1130_v42 }
 0x29a   :  { %v1025_v11 = vpop.f32.mrb[24].mxu1 }
 0x29b   :  { %v754_v12 = vadd.f32 %v1025_v11, %v1428_v48  ;;  %v745_v13 = vpop.f32.mrb[25].mxu1 }
 0x29c   :  { %v746_v14 = vadd.f32 %v1428_v48, %v745_v13  ;;  %v1026_v15 = vpop.f32.mrb[26].mxu1 }
 0x29d   :  { %v757_v16 = vadd.f32 %v1026_v15, %v1428_v48  ;;  %v748_v17 = vpop.f32.mrb[27].mxu1  ;;  %v786_v20 = vmax.f32 %v754_v12, 0.0 }
 0x29e   :  { %v749_v18 = vadd.f32 %v1428_v48, %v748_v17  ;;  %v784_v22 = vmax.f32 %v746_v14, 0.0 }
 0x29f   :  { %v787_v21 = vmax.f32 %v757_v16, 0.0 }
 0x2a0   :  { %v785_v23 = vmax.f32 %v749_v18, 0.0 }
 0x2a1   :  { %v798_v24 = vpack.c.bf16 %v787_v21, %v786_v20 }
 0x2a2   :  { %v797_v25 = vpack.c.bf16 %v785_v23, %v784_v22 }
 0x2a4   :  { %1040 = vmatpush3.bf16.xpose.msra.mxu0 %v797_v25 }
 0x2a5   :  { %1041 = vmatprep.subr.bf16.mxu0 %v1130_v42 }
 0x2ac   :  { %1042 = vmatpush3.bf16.xpose.msra.mxu0 %v798_v24 }
 0x2ad   :  { %1043 = vmatprep.subr.bf16.mxu0 %v1130_v42 }
 0x2bb   :  { %v1029_v28 = vpop.f32.mrb[28].mxu1 }
 0x2bc   :  { %v770_v29 = vadd.f32 %v1029_v28, %v1428_v48  ;;  %v761_v30 = vpop.f32.mrb[29].mxu1 }
 0x2bd   :  { %v762_v31 = vadd.f32 %v1428_v48, %v761_v30  ;;  %v1030_v32 = vpop.f32.mrb[30].mxu1 }
 0x2be   :  { %v773_v33 = vadd.f32 %v1030_v32, %v1428_v48  ;;  %v764_v34 = vpop.f32.mrb[31].mxu1  ;;  %v790_v36 = vmax.f32 %v770_v29, 0.0 }
 0x2bf   :  { %v765_v35 = vadd.f32 %v1428_v48, %v764_v34  ;;  %v788_v39 = vmax.f32 %v762_v31, 0.0 }
 0x2c0   :  { %v791_v37 = vmax.f32 %v773_v33, 0.0 }
 0x2c1   :  { %v789_v40 = vmax.f32 %v765_v35, 0.0 }
 0x2c2   :  { %v800_v41 = vpack.c.bf16 %v791_v37, %v790_v36 }
 0x2c3   :  { %v799_v43 = vpack.c.bf16 %v789_v40, %v788_v39 }
 0x2c5   :  { %1044 = vmatpush3.bf16.xpose.msra.mxu0 %v799_v43 }
 0x2c6   :  { %1045 = vmatprep.subr.bf16.mxu0 %v1130_v42 }
 0x2cd   :  { %1046 = vmatpush3.bf16.xpose.msra.mxu0 %v800_v41 }
 0x2d4   :  { %1048 = vmatmul.mubr.bf16.vlgmr.msra.gmra.mrb[4].mxu0 %v792_v44 }
 0x3a7   :  { %v835_v45 = vpop.f32.mrb[4].mxu0 }
 0x3a8   :  { %v836_v47 = vadd.f32 %v835_v45, %v404_v26  ;;  %v1049_v48 = vpop.f32.mrb[5].mxu0 }
 0x3a9   :  { %v838_v49 = vpop.f32.mrb[6].mxu0 }
 0x3aa   :  { %v843_v50 = vadd.f32 %v842_v46, %v836_v47  ;;  %v1050_v51 = vpop.f32.mrb[7].mxu0 }
 0x3ac   :  { %v873_v52 = vmul.f32 -1.442695, %v843_v50 }
 0x3ae   :  { %1122 = vpow2.f32 %v873_v52 }
 0x3b8   :  { %v1123_v53 = vpop.eup %1122 }
 0x3b9   :  { %v847_v42 = vadd.f32 1.0, %v1123_v53 }
 0x3bb   :  { %1124 = vrcp.f32 %v847_v42 }
 0x3c5   :  { %v1125_v54 = vpop.eup %1124 }
 0x3c6   :  { %850 = vst [vmem:[%s1470_s8] sm:$0x1] %v1125_v54 }

</bundles_post_ra>
